<compile_context>
chip_gen: v6e
topology: v6e:2x2x1
jax: 0.10.0
libtpu: 0.0.40
codegen_flags: <defaults>
</compile_context>

<pallas_src>
import jax
import jax.numpy as jnp
from jax.experimental import pallas as pl
from jax.experimental.pallas import tpu as pltpu


# --------------------------------------------------------------------------- #
# Helpers
# --------------------------------------------------------------------------- #
def _rup(a, b):
    return ((a + b - 1) // b) * b


def _natural_out_pad(dim_out):
    # Narrow outputs stay unpadded (masked stores are cheap on an input-DMA
    # bound kernel and total HBM traffic drops); wide outputs go lane-dense.
    return dim_out if dim_out < 128 else _rup(dim_out, 128)


def _vmem_capacity_bytes(default=64 * 1024 * 1024):
    try:
        info = pltpu.get_tpu_info()
        cap = getattr(info, "vmem_capacity_bytes", None)
        if cap:
            return int(cap)
    except Exception:
        pass
    return default  # v7x-safe fallback


# --------------------------------------------------------------------------- #
# Kernel
# --------------------------------------------------------------------------- #
def _tens_trace_kernel(x_ref, w_ref, o_ref):
    # x_ref : (tm, 9*dim_in)  VMEM tile (free reshape of native layout)
    # w_ref : (9*dim_in, tn)  VMEM tile (resident across inner M steps)
    # o_ref : (tm, tn)
    o_ref[...] = jnp.dot(
        x_ref[...], w_ref[...], preferred_element_type=jnp.float32
    ).astype(o_ref.dtype)


# --------------------------------------------------------------------------- #
# Parameter prep (hoistable: call once, reuse across forward calls)
# --------------------------------------------------------------------------- #
def prepare_tens_trace_weight(W, dtype=None):
    """W: (dim_out, dim_in) -> W_eff: (dim_in*9, dim_out_p).

    W_eff[i*9 + k, o] = W[o, i] if k in {0, 4, 8} else 0.
    dim_out_p = dim_out when dim_out < 128, else round_up(dim_out, 128).
    """
    dim_out, dim_in = W.shape
    dim_out_p = _natural_out_pad(dim_out)
    w_t = jnp.transpose(W, (1, 0))                              # (dim_in, dim_out)
    diag_mask = jnp.zeros((9,), W.dtype).at[jnp.array([0, 4, 8])].set(1)
    w_eff = w_t[:, None, :] * diag_mask[None, :, None]          # (dim_in, 9, dim_out)
    w_eff = w_eff.reshape(dim_in * 9, dim_out)
    if dim_out_p != dim_out:
        w_eff = jnp.pad(w_eff, ((0, 0), (0, dim_out_p - dim_out)))
    if dtype is not None:
        w_eff = w_eff.astype(dtype)
    return w_eff


# --------------------------------------------------------------------------- #
# Forward wrapper
# --------------------------------------------------------------------------- #
def tens_trace_forward(x, W, *, tm=None, w_eff=None):
    """x: (..., dim_in, 3, 3), W: (dim_out, dim_in) -> (..., dim_out)."""
    *batch, dim_in, t1, t2 = x.shape
    assert t1 == 3 and t2 == 3, "x must end in a (3, 3) index pair"
    dim_out, dim_in_w = W.shape
    assert dim_in_w == dim_in

    M = 1
    for b in batch:
        M *= b
    if M == 0:
        return jnp.zeros((*batch, dim_out), x.dtype)

    K = dim_in * 9
    # Free (no-copy) reshape of the native (..., dim_in, 3, 3) layout.
    x_flat = x.reshape(M, K)

    if w_eff is None:
        w_eff = prepare_tens_trace_weight(W, dtype=x.dtype)
    expected_p = _natural_out_pad(dim_out)
    assert w_eff.shape == (K, expected_p), (
        f"w_eff must have shape {(K, expected_p)}, got {w_eff.shape}")
    dim_out_p = int(w_eff.shape[1])

    itemsize = jnp.dtype(x.dtype).itemsize
    w_itemsize = jnp.dtype(w_eff.dtype).itemsize
    sub = max(8, 32 // itemsize)                 # 8 (f32), 16 (bf16), 32 (int8)
    K_pad = _rup(K, 128)                         # lane-layout footprint of x tile

    # --- generation-aware VMEM budget --------------------------------------
    vmem_cap = _vmem_capacity_bytes()            # 128 MiB v5e/v6e, 64 MiB v7x
    budget = max(32 * 1024 * 1024, (vmem_cap * 3) // 4)

    # --- N tiling: bound the resident weight (grid_n == 1 in common case) --
    def w_tile_bytes(n):
        # Counted twice in case the constant-index weight gets double-buffered.
        return 2 * K_pad * _rup(n, 128) * w_itemsize

    tn = dim_out_p
    if tn > 128:
        while tn > 128 and w_tile_bytes(tn) > budget // 3:
            tn = max(128, _rup(tn // 2, 128))
    if dim_out_p % tn != 0:
        new_p = _rup(dim_out_p, tn)
        w_eff = jnp.pad(w_eff, ((0, 0), (0, new_p - dim_out_p)))
        dim_out_p = new_p
    grid_n = dim_out_p // tn

    # --- M tiling: byte-based tiles (~>=2 MiB of x / step), sublane-aligned -
    if tm is None:
        tm = max(2048, _rup((2 * 1024 * 1024) // (K * itemsize) + 1, sub))
    tm_eff = _rup(min(tm, _rup(M, sub)), sub)

    # Megacore: keep >=2 grid steps (>=4 for big M) so the parallel M axis
    # shards across both TensorCores on v7x.
    if M >= 4096:
        tm_eff = min(tm_eff, _rup(pl.cdiv(M, 4), sub))
    elif M >= 1024:
        tm_eff = min(tm_eff, _rup(pl.cdiv(M, 2), sub))

    def vmem_bytes(t):
        t_r = _rup(t, sub)
        return (2 * t_r * K_pad * itemsize              # double-buffered x tile
                + 2 * t_r * _rup(tn, 128) * itemsize    # double-buffered out tile
                + w_tile_bytes(tn))                     # weight tile
    while tm_eff > sub and vmem_bytes(tm_eff) > budget:
        tm_eff = _rup(max(sub, tm_eff // 2), sub)

    grid_m = pl.cdiv(M, tm_eff)                  # ragged last tile handled by Pallas
    # Prefer an even number of M steps (balanced across the 2 TCs on v7x).
    if grid_m > 1 and grid_m % 2 == 1:
        tm_try = _rup(pl.cdiv(M, grid_m + 1), sub)
        if (tm_try >= sub and pl.cdiv(M, tm_try) % 2 == 0
                and vmem_bytes(tm_try) <= budget):
            tm_eff = tm_try
            grid_m = pl.cdiv(M, tm_eff)

    vmem_limit = int(min(vmem_cap,
                         max(32 * 1024 * 1024, vmem_bytes(tm_eff) + (8 << 20))))

    cost = pl.CostEstimate(
        flops=2 * M * K * dim_out_p,
        transcendentals=0,
        bytes_accessed=(grid_n * M * K + M * dim_out_p) * itemsize
                       + K * dim_out_p * w_itemsize,
    )

    out = pl.pallas_call(
        _tens_trace_kernel,
        out_shape=jax.ShapeDtypeStruct((M, dim_out_p), x.dtype),
        grid_spec=pltpu.PrefetchScalarGridSpec(
            num_scalar_prefetch=0,
            # N outer (weight tile resident across all inner M steps), M inner.
            grid=(grid_n, grid_m),
            in_specs=[
                pl.BlockSpec((tm_eff, K), lambda j, i: (i, 0)),
                pl.BlockSpec((K, tn), lambda j, i: (0, j)),
            ],
            out_specs=pl.BlockSpec((tm_eff, tn), lambda j, i: (i, j)),
        ),
        compiler_params=pltpu.CompilerParams(
            dimension_semantics=("parallel", "parallel"),
            vmem_limit_bytes=vmem_limit,
        ),
        cost_estimate=cost,
    )(x_flat, w_eff)

    if dim_out_p != dim_out:
        out = out[:, :dim_out]
    return out.reshape(*batch, dim_out)


# --------------------------------------------------------------------------- #
# Pure-JAX reference
# --------------------------------------------------------------------------- #
def tens_trace_reference(x, W):
    traced = jnp.einsum("...jj -> ...", x)                       # (..., dim_in)
    return jnp.einsum("OI, ...I -> ...O", W, traced,
                      precision=jax.lax.Precision.HIGHEST)       # (..., dim_out)


if __name__ == "__main__":
    key = jax.random.PRNGKey(0)
    kx, kw, kx2, kw2 = jax.random.split(key, 4)

    # --- test 1: small shapes matching the module (inds=2) -----------------
    batch, seq, dim_in, dim_out = 2, 8, 32, 32
    x = jax.random.normal(kx, (batch, seq, dim_in, 3, 3), dtype=jnp.float32)
    # Deterministic init matching TensLinear.self_init: std = dim_in ** -0.5
    W = jax.random.normal(kw, (dim_out, dim_in), dtype=jnp.float32) * (dim_in ** -0.5)

    # Hoisted weight prep (done once, reused across calls).
    w_eff = jax.block_until_ready(prepare_tens_trace_weight(W, dtype=x.dtype))

    out = jax.block_until_ready(tens_trace_forward(x, W, w_eff=w_eff))
    ref = tens_trace_reference(x, W)
    assert out.shape == (batch, seq, dim_out)
    assert jnp.allclose(out, ref, atol=1e-5, rtol=1e-5), "mismatch vs reference (test1)"

    # --- test 2: exercises multi-step grid + ragged last M tile ------------
    b2, s2, din2, dout2 = 2, 1028, 16, 64
    x2 = jax.random.normal(kx2, (b2, s2, din2, 3, 3), dtype=jnp.float32)
    W2 = jax.random.normal(kw2, (dout2, din2), dtype=jnp.float32) * (din2 ** -0.5)

    out2 = jax.block_until_ready(tens_trace_forward(x2, W2))
    ref2 = tens_trace_reference(x2, W2)
    assert out2.shape == (b2, s2, dout2)
    assert jnp.allclose(out2, ref2, atol=1e-5, rtol=1e-5), "mismatch vs reference (test2)"

    print("KERNEL_OK")
</pallas_src>

<mosaic_0001>
module attributes {stable_mosaic.version = 11 : i64} {
  func.func @_tens_trace_kernel(%arg0: i32, %arg1: i32, %arg2: memref<16x288xf32, #tpu.memory_space<vmem>>, %arg3: memref<288x32xf32, #tpu.memory_space<vmem>>, %arg4: memref<16x32xf32, #tpu.memory_space<vmem>>) attributes {dimension_semantics = [#tpu.dimension_semantics<parallel>, #tpu.dimension_semantics<parallel>], iteration_bounds = array<i64: 1, 1>, scalar_prefetch = 0 : i64, scratch_operands = 0 : i64, tpu.core_type = #tpu.core_type<tc>, window_params = [{transform_indices = @transform_0, window_bounds = array<i64: 16, 288>}, {transform_indices = @transform_1, window_bounds = array<i64: 288, 32>}, {transform_indices = @transform_2, window_bounds = array<i64: 16, 32>}]} {
    %c0 = arith.constant 0 : index
    %c0_0 = arith.constant 0 : index
    %0 = vector.load %arg2[%c0, %c0_0] : memref<16x288xf32, #tpu.memory_space<vmem>>, vector<16x288xf32>
    %c0_1 = arith.constant 0 : index
    %c0_2 = arith.constant 0 : index
    %1 = vector.load %arg3[%c0_1, %c0_2] : memref<288x32xf32, #tpu.memory_space<vmem>>, vector<288x32xf32>
    %cst = arith.constant dense<0.000000e+00> : vector<16x32xf32>
    %2 = tpu.matmul %0, %1, %cst {dimension_numbers = #tpu.dot_dimension_numbers<[1], [0], [0], [1], [0, 0, 1, 1], [], []>} : vector<16x288xf32>, vector<288x32xf32>, vector<16x32xf32> -> vector<16x32xf32>
    %c0_3 = arith.constant 0 : index
    %c0_4 = arith.constant 0 : index
    %3 = vector.load %arg4[%c0_3, %c0_4] : memref<16x32xf32, #tpu.memory_space<vmem>>, vector<16x32xf32>
    tpu.vector_store %arg4[%c0_3, %c0_4], %2 {strides = array<i32>} : memref<16x32xf32, #tpu.memory_space<vmem>>, vector<16x32xf32>,
    return
  }
  func.func @transform_0(%arg0: i32, %arg1: i32) -> (i32, i32) {
    %c0_i32 = arith.constant 0 : i32
    %c0_i32_0 = arith.constant 0 : i32
    return %arg1, %c0_i32 : i32, i32
  }
  func.func @transform_1(%arg0: i32, %arg1: i32) -> (i32, i32) {
    %c0_i32 = arith.constant 0 : i32
    %c0_i32_0 = arith.constant 0 : i32
    return %c0_i32, %arg0 : i32, i32
  }
  func.func @transform_2(%arg0: i32, %arg1: i32) -> (i32, i32) {
    %c0_i32 = arith.constant 0 : i32
    return %arg1, %arg0 : i32, i32
  }
}

</mosaic_0001>

<bundles_post_ra>
// kernel: tpu_custom_call.1
= control target key start
LH: loop header
LB: loop body
LE: loop exit
PB: predicated region body
PF: predicated region fallthrough
CT: control target
= control target key end

     0   :  { %s462_s0 = inlined_call_operand.vmem [shape: f32[16,288], index: 0, kind: input, shape index: {}]   ;;  %s463_s1 = inlined_call_operand.vmem [shape: f32[288,32], index: 1, kind: input, shape index: {}]   ;;  %s464_s2 = inlined_call_operand.hbm [shape: f32[16,32], index: 2, kind: output, shape index: {}]  }
   0x1   :  { %v49_v0 = vld [vmem:[%s463_s1 + $0xf8] sm:$0xff]  ;;  %v48_v2 = vld [vmem:[%s463_s1 + $0xf0] sm:$0xff]  ;;  %v47_v4 = vld [vmem:[%s463_s1 + $0xe8] sm:$0xff] }
   0x2   :  { %v33_v1 = vld [vmem:[%s463_s1 + $0x78] sm:$0xff]  ;;  %231 = vmatprep.subr.mxu0 %v49_v0  ;;  %v32_v3 = vld [vmem:[%s463_s1 + $0x70] sm:$0xff]  ;;  %v31_v5 = vld [vmem:[%s463_s1 + $0x68] sm:$0xff] }
   0x3   :  { %232 = vmatpush3.msra.mxu0 %v33_v1  ;;  %v46_v6 = vld [vmem:[%s463_s1 + $0xe0] sm:$0xff]  ;;  %v45_v8 = vld [vmem:[%s463_s1 + $0xd8] sm:$0xff]  ;;  %v44_v10 = vld [vmem:[%s463_s1 + $0xd0] sm:$0xff] }
   0x4   :  { %233 = vmatprep.subr.mxu0 %v48_v2  ;;  %v30_v7 = vld [vmem:[%s463_s1 + $0x60] sm:$0xff]  ;;  %v29_v9 = vld [vmem:[%s463_s1 + $0x58] sm:$0xff]  ;;  %v28_v11 = vld [vmem:[%s463_s1 + $0x50] sm:$0xff] }
   0x5   :  { %234 = vmatpush3.msra.mxu0 %v32_v3  ;;  %v53_v12 = vld [vmem:[%s463_s1 + $0x118] sm:$0xff]  ;;  %v43_v13 = vld [vmem:[%s463_s1 + $0xc8] sm:$0xff]  ;;  %v52_v14 = vld [vmem:[%s463_s1 + $0x110] sm:$0xff] }
   0x6   :  { %235 = vmatprep.subr.mxu0 %v47_v4  ;;  %275 = vmatprep.subr.mxu1 %v53_v12  ;;  %v27_v15 = vld [vmem:[%s463_s1 + $0x48] sm:$0xff]  ;;  %v42_v17 = vld [vmem:[%s463_s1 + $0xc0] sm:$0xff]  ;;  %v41_v20 = vld [vmem:[%s463_s1 + $0xb8] sm:$0xff] }
   0x7   :  { %236 = vmatpush3.msra.mxu0 %v31_v5  ;;  %276 = vmatpush3.msra.mxu1 %v53_v12  ;;  %v51_v16 = vld [vmem:[%s463_s1 + $0x108] sm:$0xff]  ;;  %v26_v19 = vld [vmem:[%s463_s1 + $0x40] sm:$0xff] }
   0x8   :  { %237 = vmatprep.subr.mxu0 %v46_v6  ;;  %277 = vmatprep.subr.mxu1 %v52_v14  ;;  %v13_v18 = vld [vmem:[%s462_s0 + $0x8] sm:$0xff]  ;;  %v50_v21 = vld [vmem:[%s463_s1 + $0x100] sm:$0xff] }
   0x9   :  { %238 = vmatpush3.msra.mxu0 %v30_v7  ;;  %278 = vmatpush3.msra.mxu1 %v52_v14 }
   0xa   :  { %239 = vmatprep.subr.mxu0 %v45_v8  ;;  %279 = vmatprep.subr.mxu1 %v51_v16 }
   0xb   :  { %240 = vmatpush3.msra.mxu0 %v29_v9 }
   0xc   :  { %241 = vmatprep.subr.mxu0 %v44_v10 }
   0xd   :  { %242 = vmatpush3.msra.mxu0 %v28_v11 }
   0xe   :  { %243 = vmatprep.subr.mxu0 %v43_v13 }
   0xf   :  { %244 = vmatpush3.msra.mxu0 %v27_v15 }
  0x10   :  { %7 = vsyncpa [#allocation3], 0  ;;  %245 = vmatprep.subr.mxu0 %v42_v17  ;;  %v25_v22 = vld [vmem:[%s463_s1 + $0x38] sm:$0xff]  ;;  %125 = vmatprep.mubr.f32.mxu0 %v13_v18  ;;  %v40_v23 = vld [vmem:[%s463_s1 + $0xb0] sm:$0xff]  ;;  %vm54_vm0 = vcmask 261120  }
  0x11   :  { %246 = vmatpush3.msra.mxu0 %v26_v19  ;;  %280 = vmatpush3.msra.mxu1 %v51_v16  ;;  %v14_v24 = vld [vmem:[%s462_s0 + $0x10] sm:$0xff]  ;;  %v17_v26 = vld [vmem:[%s462_s0 + $0x28] sm:$0xff]  ;;  %v38_v29 = vld [vmem:[%s463_s1 + $0xa0] sm:$0xff] }
  0x12   :  { %247 = vmatprep.subr.mxu0 %v41_v20  ;;  %v24_v25 = vld [vmem:[%s463_s1 + $0x30] sm:$0xff]  ;;  %281 = vmatprep.subr.mxu1 %v50_v21  ;;  %v39_v27 = vld [vmem:[%s463_s1 + $0xa8] sm:$0xff]  ;;  %v22_v30 = vld [vmem:[%s463_s1 + $0x20] sm:$0xff] }
  0x13   :  { %248 = vmatpush3.msra.mxu0 %v25_v22  ;;  %282 = vmatpush3.msra.mxu1 %v50_v21  ;;  %v23_v28 = vld [vmem:[%s463_s1 + $0x28] sm:$0xff]  ;;  %v37_v31 = vld [vmem:[%s463_s1 + $0x98] sm:$0xff]  ;;  %v36_v33 = vld [vmem:[%s463_s1 + $0x90] sm:$0xff] }
  0x14   :  { %249 = vmatprep.subr.mxu0 %v40_v23  ;;  %283 = vmatprep.mubr.msk.f32.mxu1 %vm54_vm0, %v14_v24  ;;  %v21_v32 = vld [vmem:[%s463_s1 + $0x18] sm:$0xff]  ;;  %v20_v34 = vld [vmem:[%s463_s1 + $0x10] sm:$0xff]  ;;  %v35_v35 = vld [vmem:[%s463_s1 + $0x88] sm:$0xff] }
  0x15   :  { %250 = vmatpush3.msra.mxu0 %v24_v25  ;;  %284 = vmatmul.mubr.msk.f32.vlgmr.msra.gmra.mxu1 %vm54_vm0, %v17_v26  ;;  %v19_v36 = vld [vmem:[%s463_s1 + $0x8] sm:$0xff]  ;;  %v34_v37 = vld [vmem:[%s463_s1 + $0x80] sm:$0xff]  ;;  %v15_v41 = vld [vmem:[%s462_s0 + $0x18] sm:$0xff] }
  0x16   :  { %251 = vmatprep.subr.mxu0 %v39_v27  ;;  %v18_v38 = vld [vmem:[%s463_s1] sm:$0xff]  ;;  %s311_s1 = smov [#allocation2]  }
  0x17   :  { %252 = vmatpush3.msra.mxu0 %v23_v28  ;;  %v12_v39 = vld [vmem:[%s462_s0] sm:$0xff]  ;;  %s218_s9 = sshll.u32 %s311_s1, 4  ;;  %s219_s9 = int_to_ptr.vmem [resolvable:$true] %s218_s9 }
  0x18   :  { %253 = vmatprep.subr.mxu0 %v38_v29  ;;  %v16_v40 = vld [vmem:[%s462_s0 + $0x20] sm:$0xff]  ;;  %s289_s10 = scalar_lea.vmem %s219_s9, 256  ;;  %p294_p1 = scmp.lt.s32.totalorder %s219_s9, %s219_s9 }
  0x19   :  { %254 = vmatpush3.msra.mxu0 %v22_v30  ;;  %p290_p0 = scmp.ne.s32.totalorder %s219_s9, %s289_s10  ;;  %p295_p2 = scmp.lt.s32.totalorder %s289_s10, %s289_s10 }
  0x1a   :  { %255 = vmatprep.subr.mxu0 %v37_v31 }
  0x1b   :  { %256 = vmatpush3.msra.mxu0 %v21_v32  ;;  %p296_p3 = por %p295_p2, %p294_p1 }
  0x1c   :  { %257 = vmatprep.subr.mxu0 %v36_v33 }
  0x1d   :  { %258 = vmatpush3.msra.mxu0 %v20_v34  ;;  %p297_p4 = pnand %p296_p3, %p290_p0 }
  0x1e   :  { %259 = vmatprep.subr.mxu0 %v35_v35 }
  0x1f   :  { %260 = vmatpush3.msra.mxu0 %v19_v36 }
  0x20   :  { %261 = vmatprep.subr.mxu0 %v34_v37 }
  0x21   :  { %262 = vmatpush3.msra.mxu0 %v18_v38 }
  0x22   :  { %126 = vmatmul.mubr.f32.vlgmr.msra.gmra.mxu0 %v12_v39 }
  0x23   :  { %130 = vmatprep.mubr.f32.mxu0 %v16_v40 }
  0x26   :  { %131 = vmatmul.mubr.f32.gmra.mxu0 %v15_v41 }
  0xd5   :  { %v285_v42 = vpop.f32.mrf.mxu1 }
  0xd7   :  { %v202_v45 = vpop.f32.mrf.mxu1 }
  0xe2   :  { %v263_v43 = vpop.f32.mrf.mxu0 }
  0xe4   :  { %v264_v44 = vpop.f32.mrf.mxu0 }
  0xe5   :  { %v265_v46 = vadd.f32 %v264_v44, %v263_v43 }
  0xe6   :  { %v266_v47 = vpop.f32.mrf.mxu0 }
  0xe7   :  { %v203_v48 = vadd.f32 %v265_v46, %v202_v45 }
  0xe8   :  { %v267_v49 = vpop.f32.mrf.mxu0 }
  0xe9   :  { %211 = vst.msk [vmem:[#allocation2] sm:$0xff] %vm54_vm0, %v203_v48  ;;  %v268_v50 = vadd.f32 %v267_v49, %v266_v47 }
  0xeb   :  { %v208_v51 = vadd.f32 %v285_v42, %v268_v50 }
  0xed   :  { %212 = vst.msk [vmem:[#allocation2 + $0x8] sm:$0xff] %vm54_vm0, %v208_v51 }
  0xee   :  { %300 = shalt.err (!%p297_p4)
}
  0xef   :  { %s312_s0 = smov 128   ;;  %s313_s11 = smov 8  }
  0xf0   :  { %224 = dma.vmem_to_hbm [thread:$0]  %s219_s9, 256, %s464_s2, [#allocation3], %s312_s0, %s312_s0, %s313_s11  }
  0xf1   :  { %309 = dma.done.wait [#allocation3], 256  }
  0xf2   :  { %310 = vsyncadd [#allocation3], 4294967040 }
  0xf3   :  { %228 = vsyncpa [#allocation3], 1 }

</bundles_post_ra>
